<compile_context>
chip_gen: v6e
topology: v6e:2x2x1
jax: 0.10.0
libtpu: 0.0.40
codegen_flags: <defaults>
</compile_context>

<pallas_src>
import functools

import jax
import jax.numpy as jnp
from jax.experimental import pallas as pl
from jax.experimental.pallas import tpu as pltpu

LANE = 128


def _round_up(x, m):
    return (x + m - 1) // m * m


def _tpu_vmem_capacity():
    try:
        info = pltpu.get_tpu_info()
        cap = int(getattr(info, "vmem_capacity_bytes", 0) or 0)
        if cap > 0:
            return cap
    except Exception:
        pass
    return 64 * 1024 * 1024  # conservative default (v7x per-TensorCore VMEM)


_VMEM_CAP = _tpu_vmem_capacity()
_VMEM_LIMIT = int(min(_VMEM_CAP // 2, 64 * 1024 * 1024))   # 32 MiB on v7x, 64 MiB on v5e/v6e
_TM_MAX = 1024 if _VMEM_CAP >= 96 * 1024 * 1024 else 512   # bigger tiles on 128 MiB parts

_PARAMS = pltpu.CompilerParams(
    dimension_semantics=("parallel",), vmem_limit_bytes=_VMEM_LIMIT
)


# ---------------------------------------------------------------------------
# Pallas kernels
# ---------------------------------------------------------------------------
def conv_stats_kernel(p_ref, w_ref, y_ref, sums_ref, sq_ref, *, cout):
    """Pass A: tiled matmul; emit bf16 y (real channels only) + per-tile BN partials.

    p_ref:    (TM, Kp)   bf16 patches tile
    w_ref:    (Kp, Cp)   bf16 weights (whole, resident)
    y_ref:    (TM, cout) bf16 conv output tile (narrow: real channels only)
    sums_ref: (1, 8, Cp) f32 per-tile sum(y)   (broadcast over sublanes)
    sq_ref:   (1, 8, Cp) f32 per-tile sum(y*y)
    """
    y = jnp.dot(p_ref[...], w_ref[...], preferred_element_type=jnp.float32)
    y_ref[...] = y[:, :cout].astype(y_ref.dtype)
    c = y.shape[-1]
    s = jnp.sum(y, axis=0, keepdims=True)        # (1, Cp)
    ss = jnp.sum(y * y, axis=0, keepdims=True)   # (1, Cp)
    sums_ref[...] = jnp.broadcast_to(s, (8, c)).reshape(1, 8, c)
    sq_ref[...] = jnp.broadcast_to(ss, (8, c)).reshape(1, 8, c)


def bn_lrelu_kernel(y_ref, sums_ref, sq_ref, gamma_ref, beta_ref, o_ref, *,
                    count, cout, eps=1e-5):
    """Pass B: combine BN partials in-kernel, normalize, LeakyReLU(0.2), store bf16."""
    inv_n = 1.0 / count
    s = jnp.sum(sums_ref[...], axis=0)[0:1, :]    # (1, Cp)
    ss = jnp.sum(sq_ref[...], axis=0)[0:1, :]
    mean = s * inv_n
    var = jnp.maximum(ss * inv_n - mean * mean, 0.0)    # biased var (BN training mode)
    scale = gamma_ref[...] * jax.lax.rsqrt(var + eps)   # (1, Cp)
    shift = beta_ref[...] - mean * scale
    y = y_ref[...].astype(jnp.float32)                  # f32 VPU math (v5e-friendly)
    z = y * scale[:, :cout] + shift[:, :cout]
    o_ref[...] = jnp.where(z > 0, z, 0.2 * z).astype(o_ref.dtype)


def final_sigmoid_kernel(p_ref, w_ref, o_ref):
    """Final Conv2d (as matmul) + Sigmoid."""
    y = jnp.dot(p_ref[...], w_ref[...], preferred_element_type=jnp.float32)
    sig = pl.reciprocal(1.0 + jnp.exp(-y), approx=True)
    o_ref[...] = jnp.minimum(sig, 1.0)   # sigmoid > 0 always; only guard approx overshoot


# ---------------------------------------------------------------------------
# Glue: im2col (plain JAX gathers/reshapes) + operand padding / tile choice
# ---------------------------------------------------------------------------
def im2col(x_nhwc, kh, kw, stride, pad):
    # TODO(synk): fuse this patch extraction into the matmul kernel (strided DMA).
    x = jnp.pad(x_nhwc, ((0, 0), (pad, pad), (pad, pad), (0, 0)))
    n, hp, wp, c = x.shape
    ho = (hp - kh) // stride + 1
    wo = (wp - kw) // stride + 1
    cols = []
    for i in range(kh):
        for j in range(kw):
            cols.append(
                x[:, i : i + stride * ho : stride, j : j + stride * wo : stride, :]
            )
    # (N, Ho, Wo, KH*KW, Cin) so the flattened K-order is (kh, kw, cin)
    p = jnp.stack(cols, axis=3)
    return p.reshape(n * ho * wo, kh * kw * c), (n, ho, wo)


def _choose_tm(m, k_pad, c_pad, tm_max):
    # >=2 M-tiles when there is enough work so v7x's two TensorCores both get a
    # share of the "parallel" axis (no measured effect on single-TC v5e/v6e).
    want = 2 if m >= 256 else 1
    tm = max(8, min(tm_max, _round_up(-(-m // want), 8)))

    def need(t):  # conservative double-buffered working-set estimate
        return (2 * t * k_pad * 2          # patches tile (bf16, 2 buffers)
                + 2 * k_pad * c_pad * 2    # resident weights (count 2x to be safe)
                + 2 * t * c_pad * 4        # f32 matmul result / output tile
                + 4 * 8 * c_pad * 4)       # stats tiles

    while tm > 8 and need(tm) > 0.8 * _VMEM_LIMIT:
        tm = max(8, _round_up(tm // 2, 8))
    return tm


def _pad_operands(patches, w_oihw, tm_max):
    """Pad M to a tile multiple, K and Cout to 128-lane multiples; cast to bf16."""
    cout, cin, kh, kw = w_oihw.shape
    m, k = patches.shape
    k_pad = _round_up(k, LANE)
    c_pad = _round_up(cout, LANE)
    tm = _choose_tm(m, k_pad, c_pad, tm_max)
    m_pad = _round_up(m, tm)
    num_tiles = m_pad // tm

    patches = jnp.pad(patches.astype(jnp.bfloat16), ((0, m_pad - m), (0, k_pad - k)))
    w_mat = jnp.transpose(w_oihw, (2, 3, 1, 0)).reshape(k, cout)   # (kh,kw,cin) K-order
    w_mat = jnp.pad(w_mat, ((0, k_pad - k), (0, c_pad - cout))).astype(jnp.bfloat16)
    return patches, w_mat, (m, m_pad, k_pad, cout, c_pad, tm, num_tiles)


# ---------------------------------------------------------------------------
# Layer wrappers
# ---------------------------------------------------------------------------
def run_convblock(x_nhwc, w_oihw, gamma, beta, *, stride=2, pad=1, tm_max=_TM_MAX):
    kh, kw = w_oihw.shape[2], w_oihw.shape[3]
    patches, (n, ho, wo) = im2col(x_nhwc.astype(jnp.bfloat16), kh, kw, stride, pad)
    patches, w_mat, (m, m_pad, k_pad, cout, c_pad, tm, num_tiles) = _pad_operands(
        patches, w_oihw, tm_max
    )

    cost_a = pl.CostEstimate(
        flops=2 * m_pad * k_pad * c_pad,
        transcendentals=0,
        bytes_accessed=patches.size * 2 + w_mat.size * 2
        + m_pad * cout * 2 + 2 * num_tiles * 8 * c_pad * 4,
    )
    y, sums, sq = pl.pallas_call(
        functools.partial(conv_stats_kernel, cout=cout),
        out_shape=(
            jax.ShapeDtypeStruct((m_pad, cout), jnp.bfloat16),
            jax.ShapeDtypeStruct((num_tiles, 8, c_pad), jnp.float32),
            jax.ShapeDtypeStruct((num_tiles, 8, c_pad), jnp.float32),
        ),
        grid=(num_tiles,),
        in_specs=[
            pl.BlockSpec((tm, k_pad), lambda i: (i, 0)),
            pl.BlockSpec((k_pad, c_pad), lambda i: (0, 0)),
        ],
        out_specs=(
            pl.BlockSpec((tm, cout), lambda i: (i, 0)),
            pl.BlockSpec((1, 8, c_pad), lambda i: (i, 0, 0)),
            pl.BlockSpec((1, 8, c_pad), lambda i: (i, 0, 0)),
        ),
        compiler_params=_PARAMS,
        cost_estimate=cost_a,
    )(patches, w_mat)

    # Only per-channel parameter padding remains outside the kernels.
    gamma_p = jnp.pad(gamma.astype(jnp.float32), (0, c_pad - cout)).reshape(1, c_pad)
    beta_p = jnp.pad(beta.astype(jnp.float32), (0, c_pad - cout)).reshape(1, c_pad)

    cost_b = pl.CostEstimate(
        flops=6 * m_pad * cout,
        transcendentals=c_pad,
        bytes_accessed=2 * m_pad * cout * 2
        + 2 * num_tiles * 8 * c_pad * 4 + 2 * c_pad * 4,
    )
    out = pl.pallas_call(
        functools.partial(bn_lrelu_kernel, count=m, cout=cout),
        out_shape=jax.ShapeDtypeStruct((m_pad, cout), jnp.bfloat16),
        grid=(num_tiles,),
        in_specs=[
            pl.BlockSpec((tm, cout), lambda i: (i, 0)),
            pl.BlockSpec((num_tiles, 8, c_pad), lambda i: (0, 0, 0)),
            pl.BlockSpec((num_tiles, 8, c_pad), lambda i: (0, 0, 0)),
            pl.BlockSpec((1, c_pad), lambda i: (0, 0)),
            pl.BlockSpec((1, c_pad), lambda i: (0, 0)),
        ],
        out_specs=pl.BlockSpec((tm, cout), lambda i: (i, 0)),
        compiler_params=_PARAMS,
        cost_estimate=cost_b,
    )(y, sums, sq, gamma_p, beta_p)

    return out[:m].reshape(n, ho, wo, cout)


def run_final(x_nhwc, w_oihw, *, tm_max=_TM_MAX):
    kh, kw = w_oihw.shape[2], w_oihw.shape[3]
    n, h, w, c = x_nhwc.shape
    if h == kh and w == kw:
        # stride-1, pad-0 conv whose window covers the whole map: im2col is a reshape,
        # and (h, w, c) flattening matches the (kh, kw, cin) weight K-order.
        patches = x_nhwc.astype(jnp.bfloat16).reshape(n, kh * kw * c)
        ho = wo = 1
    else:
        patches, (n, ho, wo) = im2col(x_nhwc.astype(jnp.bfloat16), kh, kw, 1, 0)
    patches, w_mat, (m, m_pad, k_pad, cout, c_pad, tm, num_tiles) = _pad_operands(
        patches, w_oihw, tm_max
    )

    cost = pl.CostEstimate(
        flops=2 * m_pad * k_pad * c_pad,
        transcendentals=m_pad * c_pad,
        bytes_accessed=patches.size * 2 + w_mat.size * 2 + m_pad * c_pad * 4,
    )
    out = pl.pallas_call(
        final_sigmoid_kernel,
        out_shape=jax.ShapeDtypeStruct((m_pad, c_pad), jnp.float32),
        grid=(num_tiles,),
        in_specs=[
            pl.BlockSpec((tm, k_pad), lambda i: (i, 0)),
            pl.BlockSpec((k_pad, c_pad), lambda i: (0, 0)),
        ],
        out_specs=pl.BlockSpec((tm, c_pad), lambda i: (i, 0)),
        compiler_params=_PARAMS,
        cost_estimate=cost,
    )(patches, w_mat)
    return out[:m, :cout].reshape(n, ho, wo, cout)


# ---------------------------------------------------------------------------
# Discriminator
# ---------------------------------------------------------------------------
def init_discriminator_params(key, n_features, n_layers, n_channels):
    params = {"blocks": []}
    in_ch = n_channels
    for layer in range(n_layers):
        out_ch = n_features * 2 ** layer
        key, kw_, kg, kb = jax.random.split(key, 4)
        params["blocks"].append(
            dict(
                w=jax.random.normal(kw_, (out_ch, in_ch, 4, 4), jnp.float32) * 0.05,
                gamma=1.0 + 0.1 * jax.random.normal(kg, (out_ch,), jnp.float32),
                beta=0.1 * jax.random.normal(kb, (out_ch,), jnp.float32),
            )
        )
        in_ch = out_ch
    key, kw_ = jax.random.split(key)
    params["final_w"] = jax.random.normal(kw_, (1, in_ch, 4, 4), jnp.float32) * 0.05
    return params


@jax.jit
def discriminator_forward(x_nchw, params):
    # PyTorch NCHW input -> NHWC for the kernels
    x = jnp.transpose(x_nchw, (0, 2, 3, 1))
    for blk in params["blocks"]:
        x = run_convblock(x, blk["w"], blk["gamma"], blk["beta"], stride=2, pad=1)
    x = run_final(x, params["final_w"])          # (N, 1, 1, 1) NHWC
    return jnp.transpose(x, (0, 3, 1, 2))        # back to NCHW, matching PyTorch


# Pure-JAX f32 reference (same conv-as-matmul formulation) for a sanity check.
def _reference_forward(x_nchw, params):
    x = jnp.transpose(x_nchw, (0, 2, 3, 1)).astype(jnp.float32)
    for blk in params["blocks"]:
        w = blk["w"]
        patches, (n, ho, wo) = im2col(x, w.shape[2], w.shape[3], 2, 1)
        wm = jnp.transpose(w, (2, 3, 1, 0)).reshape(-1, w.shape[0])
        y = patches @ wm
        mean = jnp.mean(y, axis=0)
        var = jnp.mean(y * y, axis=0) - mean * mean
        z = (y - mean) * jax.lax.rsqrt(var + 1e-5) * blk["gamma"] + blk["beta"]
        z = jnp.where(z > 0, z, 0.2 * z)
        x = z.reshape(n, ho, wo, w.shape[0])
    w = params["final_w"]
    patches, (n, ho, wo) = im2col(x, w.shape[2], w.shape[3], 1, 0)
    wm = jnp.transpose(w, (2, 3, 1, 0)).reshape(-1, 1)
    y = jax.nn.sigmoid(patches @ wm).reshape(n, ho, wo, 1)
    return jnp.transpose(y, (0, 3, 1, 2))


if __name__ == "__main__":
    key = jax.random.PRNGKey(0)
    k_in, k_par = jax.random.split(key)

    n_features, n_layers, n_channels = 8, 2, 3
    batch, spatial = 2, 16  # 16 -> 8 -> 4 -> final 4x4 conv -> 1x1

    x = jax.random.normal(k_in, (batch, n_channels, spatial, spatial), jnp.float32)
    params = init_discriminator_params(k_par, n_features, n_layers, n_channels)

    out = jax.block_until_ready(discriminator_forward(x, params))
    assert out.shape == (batch, 1, 1, 1), out.shape
    assert bool(jnp.all(jnp.isfinite(out)))
    assert bool(jnp.all((out >= 0.0) & (out <= 1.0)))

    # bf16 MXU feeds + approx sigmoid reciprocal -> loose tolerance vs f32 reference
    ref = jax.block_until_ready(_reference_forward(x, params))
    max_err = float(jnp.max(jnp.abs(out - ref)))
    assert max_err < 0.15, f"mismatch vs f32 reference: {max_err}"
    print("KERNEL_OK")
</pallas_src>

<mosaic_0001>
module attributes {stable_mosaic.version = 11 : i64} {
  func.func @bn_lrelu_kernel(%arg0: i32, %arg1: memref<128x8xbf16, #tpu.memory_space<vmem>>, %arg2: memref<1x8x128xf32, #tpu.memory_space<vmem>>, %arg3: memref<1x8x128xf32, #tpu.memory_space<vmem>>, %arg4: memref<1x128xf32, #tpu.memory_space<vmem>>, %arg5: memref<1x128xf32, #tpu.memory_space<vmem>>, %arg6: memref<128x8xbf16, #tpu.memory_space<vmem>>) attributes {dimension_semantics = [#tpu.dimension_semantics<parallel>], iteration_bounds = array<i64: 1>, scalar_prefetch = 0 : i64, scratch_operands = 0 : i64, tpu.core_type = #tpu.core_type<tc>, window_params = [{transform_indices = @transform_0, window_bounds = array<i64: 128, 8>}, {pipeline_mode = #tpu.pipeline_mode<synchronous>, transform_indices = @transform_1, window_bounds = array<i64: 1, 8, 128>}, {pipeline_mode = #tpu.pipeline_mode<synchronous>, transform_indices = @transform_2, window_bounds = array<i64: 1, 8, 128>}, {pipeline_mode = #tpu.pipeline_mode<synchronous>, transform_indices = @transform_3, window_bounds = array<i64: 1, 128>}, {pipeline_mode = #tpu.pipeline_mode<synchronous>, transform_indices = @transform_4, window_bounds = array<i64: 1, 128>}, {transform_indices = @transform_5, window_bounds = array<i64: 128, 8>}]} {
    %c0 = arith.constant 0 : index
    %c0_0 = arith.constant 0 : index
    %c0_1 = arith.constant 0 : index
    %0 = vector.load %arg2[%c0, %c0_0, %c0_1] : memref<1x8x128xf32, #tpu.memory_space<vmem>>, vector<1x8x128xf32>
    %cst = arith.constant dense<0.000000e+00> : vector<8x128xf32>
    %1 = vector.multi_reduction <add>, %0, %cst [0] : vector<1x8x128xf32> to vector<8x128xf32>
    %2 = vector.extract_strided_slice %1 {offsets = [0, 0], sizes = [1, 128], strides = [1, 1]} : vector<8x128xf32> to vector<1x128xf32>
    %c0_2 = arith.constant 0 : index
    %c0_3 = arith.constant 0 : index
    %c0_4 = arith.constant 0 : index
    %3 = vector.load %arg3[%c0_2, %c0_3, %c0_4] : memref<1x8x128xf32, #tpu.memory_space<vmem>>, vector<1x8x128xf32>
    %cst_5 = arith.constant dense<0.000000e+00> : vector<8x128xf32>
    %4 = vector.multi_reduction <add>, %3, %cst_5 [0] : vector<1x8x128xf32> to vector<8x128xf32>
    %5 = vector.extract_strided_slice %4 {offsets = [0, 0], sizes = [1, 128], strides = [1, 1]} : vector<8x128xf32> to vector<1x128xf32>
    %cst_6 = arith.constant 7.812500e-03 : f32
    %6 = vector.broadcast %cst_6 : f32 to vector<1x128xf32>
    %7 = arith.mulf %2, %6 : vector<1x128xf32>
    %cst_7 = arith.constant 7.812500e-03 : f32
    %8 = vector.broadcast %cst_7 : f32 to vector<1x128xf32>
    %9 = arith.mulf %5, %8 : vector<1x128xf32>
    %10 = arith.mulf %7, %7 : vector<1x128xf32>
    %11 = arith.subf %9, %10 : vector<1x128xf32>
    %cst_8 = arith.constant 0.000000e+00 : f32
    %12 = vector.broadcast %cst_8 : f32 to vector<1x128xf32>
    %13 = arith.maximumf %11, %12 : vector<1x128xf32>
    %c0_9 = arith.constant 0 : index
    %c0_10 = arith.constant 0 : index
    %14 = vector.load %arg4[%c0_9, %c0_10] : memref<1x128xf32, #tpu.memory_space<vmem>>, vector<1x128xf32>
    %cst_11 = arith.constant 9.99999974E-6 : f32
    %15 = vector.broadcast %cst_11 : f32 to vector<1x128xf32>
    %16 = arith.addf %13, %15 : vector<1x128xf32>
    %17 = math.rsqrt %16 : vector<1x128xf32>
    %18 = arith.mulf %14, %17 : vector<1x128xf32>
    %c0_12 = arith.constant 0 : index
    %c0_13 = arith.constant 0 : index
    %19 = vector.load %arg5[%c0_12, %c0_13] : memref<1x128xf32, #tpu.memory_space<vmem>>, vector<1x128xf32>
    %20 = arith.mulf %7, %18 : vector<1x128xf32>
    %21 = arith.subf %19, %20 : vector<1x128xf32>
    %c0_14 = arith.constant 0 : index
    %c0_15 = arith.constant 0 : index
    %22 = vector.load %arg1[%c0_14, %c0_15] : memref<128x8xbf16, #tpu.memory_space<vmem>>, vector<128x8xbf16>
    %23 = arith.extf %22 : vector<128x8xbf16> to vector<128x8xf32>
    %24 = vector.extract_strided_slice %18 {offsets = [0, 0], sizes = [1, 8], strides = [1, 1]} : vector<1x128xf32> to vector<1x8xf32>
    %25 = vector.broadcast %24 : vector<1x8xf32> to vector<128x8xf32>
    %26 = arith.mulf %23, %25 : vector<128x8xf32>
    %27 = vector.extract_strided_slice %21 {offsets = [0, 0], sizes = [1, 8], strides = [1, 1]} : vector<1x128xf32> to vector<1x8xf32>
    %28 = vector.broadcast %27 : vector<1x8xf32> to vector<128x8xf32>
    %29 = arith.addf %26, %28 : vector<128x8xf32>
    %cst_16 = arith.constant 0.000000e+00 : f32
    %30 = vector.broadcast %cst_16 : f32 to vector<128x8xf32>
    %31 = arith.cmpf ogt, %29, %30 : vector<128x8xf32>
    %cst_17 = arith.constant 2.000000e-01 : f32
    %32 = vector.broadcast %cst_17 : f32 to vector<128x8xf32>
    %33 = arith.mulf %32, %29 : vector<128x8xf32>
    %34 = arith.select %31, %29, %33 : vector<128x8xi1>, vector<128x8xf32>
    %35 = arith.truncf %34 : vector<128x8xf32> to vector<128x8xbf16>
    %c0_18 = arith.constant 0 : index
    %c0_19 = arith.constant 0 : index
    %36 = vector.load %arg6[%c0_18, %c0_19] : memref<128x8xbf16, #tpu.memory_space<vmem>>, vector<128x8xbf16>
    tpu.vector_store %arg6[%c0_18, %c0_19], %35 {strides = array<i32>} : memref<128x8xbf16, #tpu.memory_space<vmem>>, vector<128x8xbf16>,
    return
  }
  func.func @transform_0(%arg0: i32) -> (i32, i32) {
    %c0_i32 = arith.constant 0 : i32
    %c0_i32_0 = arith.constant 0 : i32
    return %arg0, %c0_i32 : i32, i32
  }
  func.func @transform_1(%arg0: i32) -> (i32, i32, i32) {
    %c0_i32 = arith.constant 0 : i32
    %c0_i32_0 = arith.constant 0 : i32
    %c0_i32_1 = arith.constant 0 : i32
    %c0_i32_2 = arith.constant 0 : i32
    return %c0_i32, %c0_i32_0, %c0_i32_1 : i32, i32, i32
  }
  func.func @transform_2(%arg0: i32) -> (i32, i32, i32) {
    %c0_i32 = arith.constant 0 : i32
    %c0_i32_0 = arith.constant 0 : i32
    %c0_i32_1 = arith.constant 0 : i32
    %c0_i32_2 = arith.constant 0 : i32
    return %c0_i32, %c0_i32_0, %c0_i32_1 : i32, i32, i32
  }
  func.func @transform_3(%arg0: i32) -> (i32, i32) {
    %c0_i32 = arith.constant 0 : i32
    %c0_i32_0 = arith.constant 0 : i32
    %c0_i32_1 = arith.constant 0 : i32
    return %c0_i32, %c0_i32_0 : i32, i32
  }
  func.func @transform_4(%arg0: i32) -> (i32, i32) {
    %c0_i32 = arith.constant 0 : i32
    %c0_i32_0 = arith.constant 0 : i32
    %c0_i32_1 = arith.constant 0 : i32
    return %c0_i32, %c0_i32_0 : i32, i32
  }
  func.func @transform_5(%arg0: i32) -> (i32, i32) {
    %c0_i32 = arith.constant 0 : i32
    %c0_i32_0 = arith.constant 0 : i32
    return %arg0, %c0_i32 : i32, i32
  }
}

module attributes {stable_mosaic.version = 11 : i64} {
  func.func @conv_stats_kernel(%arg0: i32, %arg1: memref<128x128xbf16, #tpu.memory_space<vmem>>, %arg2: memref<128x128xbf16, #tpu.memory_space<vmem>>, %arg3: memref<128x8xbf16, #tpu.memory_space<vmem>>, %arg4: memref<1x8x128xf32, #tpu.memory_space<vmem>>, %arg5: memref<1x8x128xf32, #tpu.memory_space<vmem>>) attributes {dimension_semantics = [#tpu.dimension_semantics<parallel>], iteration_bounds = array<i64: 1>, scalar_prefetch = 0 : i64, scratch_operands = 0 : i64, tpu.core_type = #tpu.core_type<tc>, window_params = [{transform_indices = @transform_0, window_bounds = array<i64: 128, 128>}, {pipeline_mode = #tpu.pipeline_mode<synchronous>, transform_indices = @transform_1, window_bounds = array<i64: 128, 128>}, {transform_indices = @transform_2, window_bounds = array<i64: 128, 8>}, {transform_indices = @transform_3, window_bounds = array<i64: 1, 8, 128>}, {transform_indices = @transform_4, window_bounds = array<i64: 1, 8, 128>}]} {
    %c0 = arith.constant 0 : index
    %c0_0 = arith.constant 0 : index
    %0 = vector.load %arg1[%c0, %c0_0] : memref<128x128xbf16, #tpu.memory_space<vmem>>, vector<128x128xbf16>
    %c0_1 = arith.constant 0 : index
    %c0_2 = arith.constant 0 : index
    %1 = vector.load %arg2[%c0_1, %c0_2] : memref<128x128xbf16, #tpu.memory_space<vmem>>, vector<128x128xbf16>
    %cst = arith.constant dense<0.000000e+00> : vector<128x128xf32>
    %2 = tpu.matmul %0, %1, %cst {dimension_numbers = #tpu.dot_dimension_numbers<[1], [0], [0], [1], [0, 0, 1, 1], [], []>} : vector<128x128xbf16>, vector<128x128xbf16>, vector<128x128xf32> -> vector<128x128xf32>
    %3 = vector.extract_strided_slice %2 {offsets = [0, 0], sizes = [128, 8], strides = [1, 1]} : vector<128x128xf32> to vector<128x8xf32>
    %4 = arith.truncf %3 : vector<128x8xf32> to vector<128x8xbf16>
    %c0_3 = arith.constant 0 : index
    %c0_4 = arith.constant 0 : index
    %5 = vector.load %arg3[%c0_3, %c0_4] : memref<128x8xbf16, #tpu.memory_space<vmem>>, vector<128x8xbf16>
    tpu.vector_store %arg3[%c0_3, %c0_4], %4 {strides = array<i32>} : memref<128x8xbf16, #tpu.memory_space<vmem>>, vector<128x8xbf16>,
    %cst_5 = arith.constant dense<0.000000e+00> : vector<128xf32>
    %6 = vector.multi_reduction <add>, %2, %cst_5 [0] : vector<128x128xf32> to vector<128xf32>
    %7 = vector.shape_cast %6 : vector<128xf32> to vector<1x128xf32>
    %8 = arith.mulf %2, %2 : vector<128x128xf32>
    %cst_6 = arith.constant dense<0.000000e+00> : vector<128xf32>
    %9 = vector.multi_reduction <add>, %8, %cst_6 [0] : vector<128x128xf32> to vector<128xf32>
    %10 = vector.shape_cast %9 : vector<128xf32> to vector<1x128xf32>
    %11 = vector.shape_cast %7 : vector<1x128xf32> to vector<1x128xf32>
    %12 = vector.broadcast %11 : vector<1x128xf32> to vector<8x128xf32>
    %13 = vector.shape_cast %12 : vector<8x128xf32> to vector<1x8x128xf32>
    %c0_7 = arith.constant 0 : index
    %c0_8 = arith.constant 0 : index
    %c0_9 = arith.constant 0 : index
    %14 = vector.load %arg4[%c0_7, %c0_8, %c0_9] : memref<1x8x128xf32, #tpu.memory_space<vmem>>, vector<1x8x128xf32>
    tpu.vector_store %arg4[%c0_7, %c0_8, %c0_9], %13 {strides = array<i32>} : memref<1x8x128xf32, #tpu.memory_space<vmem>>, vector<1x8x128xf32>,
    %15 = vector.shape_cast %10 : vector<1x128xf32> to vector<1x128xf32>
    %16 = vector.broadcast %15 : vector<1x128xf32> to vector<8x128xf32>
    %17 = vector.shape_cast %16 : vector<8x128xf32> to vector<1x8x128xf32>
    %c0_10 = arith.constant 0 : index
    %c0_11 = arith.constant 0 : index
    %c0_12 = arith.constant 0 : index
    %18 = vector.load %arg5[%c0_10, %c0_11, %c0_12] : memref<1x8x128xf32, #tpu.memory_space<vmem>>, vector<1x8x128xf32>
    tpu.vector_store %arg5[%c0_10, %c0_11, %c0_12], %17 {strides = array<i32>} : memref<1x8x128xf32, #tpu.memory_space<vmem>>, vector<1x8x128xf32>,
    return
  }
  func.func @transform_0(%arg0: i32) -> (i32, i32) {
    %c0_i32 = arith.constant 0 : i32
    %c0_i32_0 = arith.constant 0 : i32
    return %arg0, %c0_i32 : i32, i32
  }
  func.func @transform_1(%arg0: i32) -> (i32, i32) {
    %c0_i32 = arith.constant 0 : i32
    %c0_i32_0 = arith.constant 0 : i32
    %c0_i32_1 = arith.constant 0 : i32
    return %c0_i32, %c0_i32_0 : i32, i32
  }
  func.func @transform_2(%arg0: i32) -> (i32, i32) {
    %c0_i32 = arith.constant 0 : i32
    %c0_i32_0 = arith.constant 0 : i32
    return %arg0, %c0_i32 : i32, i32
  }
  func.func @transform_3(%arg0: i32) -> (i32, i32, i32) {
    %c0_i32 = arith.constant 0 : i32
    %c0_i32_0 = arith.constant 0 : i32
    %c0_i32_1 = arith.constant 0 : i32
    return %arg0, %c0_i32, %c0_i32_0 : i32, i32, i32
  }
  func.func @transform_4(%arg0: i32) -> (i32, i32, i32) {
    %c0_i32 = arith.constant 0 : i32
    %c0_i32_0 = arith.constant 0 : i32
    %c0_i32_1 = arith.constant 0 : i32
    return %arg0, %c0_i32, %c0_i32_0 : i32, i32, i32
  }
}

module attributes {stable_mosaic.version = 11 : i64} {
  func.func @bn_lrelu_kernel(%arg0: i32, %arg1: memref<32x16xbf16, #tpu.memory_space<vmem>>, %arg2: memref<1x8x128xf32, #tpu.memory_space<vmem>>, %arg3: memref<1x8x128xf32, #tpu.memory_space<vmem>>, %arg4: memref<1x128xf32, #tpu.memory_space<vmem>>, %arg5: memref<1x128xf32, #tpu.memory_space<vmem>>, %arg6: memref<32x16xbf16, #tpu.memory_space<vmem>>) attributes {dimension_semantics = [#tpu.dimension_semantics<parallel>], iteration_bounds = array<i64: 1>, scalar_prefetch = 0 : i64, scratch_operands = 0 : i64, tpu.core_type = #tpu.core_type<tc>, window_params = [{transform_indices = @transform_0, window_bounds = array<i64: 32, 16>}, {pipeline_mode = #tpu.pipeline_mode<synchronous>, transform_indices = @transform_1, window_bounds = array<i64: 1, 8, 128>}, {pipeline_mode = #tpu.pipeline_mode<synchronous>, transform_indices = @transform_2, window_bounds = array<i64: 1, 8, 128>}, {pipeline_mode = #tpu.pipeline_mode<synchronous>, transform_indices = @transform_3, window_bounds = array<i64: 1, 128>}, {pipeline_mode = #tpu.pipeline_mode<synchronous>, transform_indices = @transform_4, window_bounds = array<i64: 1, 128>}, {transform_indices = @transform_5, window_bounds = array<i64: 32, 16>}]} {
    %c0 = arith.constant 0 : index
    %c0_0 = arith.constant 0 : index
    %c0_1 = arith.constant 0 : index
    %0 = vector.load %arg2[%c0, %c0_0, %c0_1] : memref<1x8x128xf32, #tpu.memory_space<vmem>>, vector<1x8x128xf32>
    %cst = arith.constant dense<0.000000e+00> : vector<8x128xf32>
    %1 = vector.multi_reduction <add>, %0, %cst [0] : vector<1x8x128xf32> to vector<8x128xf32>
    %2 = vector.extract_strided_slice %1 {offsets = [0, 0], sizes = [1, 128], strides = [1, 1]} : vector<8x128xf32> to vector<1x128xf32>
    %c0_2 = arith.constant 0 : index
    %c0_3 = arith.constant 0 : index
    %c0_4 = arith.constant 0 : index
    %3 = vector.load %arg3[%c0_2, %c0_3, %c0_4] : memref<1x8x128xf32, #tpu.memory_space<vmem>>, vector<1x8x128xf32>
    %cst_5 = arith.constant dense<0.000000e+00> : vector<8x128xf32>
    %4 = vector.multi_reduction <add>, %3, %cst_5 [0] : vector<1x8x128xf32> to vector<8x128xf32>
    %5 = vector.extract_strided_slice %4 {offsets = [0, 0], sizes = [1, 128], strides = [1, 1]} : vector<8x128xf32> to vector<1x128xf32>
    %cst_6 = arith.constant 3.125000e-02 : f32
    %6 = vector.broadcast %cst_6 : f32 to vector<1x128xf32>
    %7 = arith.mulf %2, %6 : vector<1x128xf32>
    %cst_7 = arith.constant 3.125000e-02 : f32
    %8 = vector.broadcast %cst_7 : f32 to vector<1x128xf32>
    %9 = arith.mulf %5, %8 : vector<1x128xf32>
    %10 = arith.mulf %7, %7 : vector<1x128xf32>
    %11 = arith.subf %9, %10 : vector<1x128xf32>
    %cst_8 = arith.constant 0.000000e+00 : f32
    %12 = vector.broadcast %cst_8 : f32 to vector<1x128xf32>
    %13 = arith.maximumf %11, %12 : vector<1x128xf32>
    %c0_9 = arith.constant 0 : index
    %c0_10 = arith.constant 0 : index
    %14 = vector.load %arg4[%c0_9, %c0_10] : memref<1x128xf32, #tpu.memory_space<vmem>>, vector<1x128xf32>
    %cst_11 = arith.constant 9.99999974E-6 : f32
    %15 = vector.broadcast %cst_11 : f32 to vector<1x128xf32>
    %16 = arith.addf %13, %15 : vector<1x128xf32>
    %17 = math.rsqrt %16 : vector<1x128xf32>
    %18 = arith.mulf %14, %17 : vector<1x128xf32>
    %c0_12 = arith.constant 0 : index
    %c0_13 = arith.constant 0 : index
    %19 = vector.load %arg5[%c0_12, %c0_13] : memref<1x128xf32, #tpu.memory_space<vmem>>, vector<1x128xf32>
    %20 = arith.mulf %7, %18 : vector<1x128xf32>
    %21 = arith.subf %19, %20 : vector<1x128xf32>
    %c0_14 = arith.constant 0 : index
    %c0_15 = arith.constant 0 : index
    %22 = vector.load %arg1[%c0_14, %c0_15] : memref<32x16xbf16, #tpu.memory_space<vmem>>, vector<32x16xbf16>
    %23 = arith.extf %22 : vector<32x16xbf16> to vector<32x16xf32>
    %24 = vector.extract_strided_slice %18 {offsets = [0, 0], sizes = [1, 16], strides = [1, 1]} : vector<1x128xf32> to vector<1x16xf32>
    %25 = vector.broadcast %24 : vector<1x16xf32> to vector<32x16xf32>
    %26 = arith.mulf %23, %25 : vector<32x16xf32>
    %27 = vector.extract_strided_slice %21 {offsets = [0, 0], sizes = [1, 16], strides = [1, 1]} : vector<1x128xf32> to vector<1x16xf32>
    %28 = vector.broadcast %27 : vector<1x16xf32> to vector<32x16xf32>
    %29 = arith.addf %26, %28 : vector<32x16xf32>
    %cst_16 = arith.constant 0.000000e+00 : f32
    %30 = vector.broadcast %cst_16 : f32 to vector<32x16xf32>
    %31 = arith.cmpf ogt, %29, %30 : vector<32x16xf32>
    %cst_17 = arith.constant 2.000000e-01 : f32
    %32 = vector.broadcast %cst_17 : f32 to vector<32x16xf32>
    %33 = arith.mulf %32, %29 : vector<32x16xf32>
    %34 = arith.select %31, %29, %33 : vector<32x16xi1>, vector<32x16xf32>
    %35 = arith.truncf %34 : vector<32x16xf32> to vector<32x16xbf16>
    %c0_18 = arith.constant 0 : index
    %c0_19 = arith.constant 0 : index
    %36 = vector.load %arg6[%c0_18, %c0_19] : memref<32x16xbf16, #tpu.memory_space<vmem>>, vector<32x16xbf16>
    tpu.vector_store %arg6[%c0_18, %c0_19], %35 {strides = array<i32>} : memref<32x16xbf16, #tpu.memory_space<vmem>>, vector<32x16xbf16>,
    return
  }
  func.func @transform_0(%arg0: i32) -> (i32, i32) {
    %c0_i32 = arith.constant 0 : i32
    %c0_i32_0 = arith.constant 0 : i32
    return %arg0, %c0_i32 : i32, i32
  }
  func.func @transform_1(%arg0: i32) -> (i32, i32, i32) {
    %c0_i32 = arith.constant 0 : i32
    %c0_i32_0 = arith.constant 0 : i32
    %c0_i32_1 = arith.constant 0 : i32
    %c0_i32_2 = arith.constant 0 : i32
    return %c0_i32, %c0_i32_0, %c0_i32_1 : i32, i32, i32
  }
  func.func @transform_2(%arg0: i32) -> (i32, i32, i32) {
    %c0_i32 = arith.constant 0 : i32
    %c0_i32_0 = arith.constant 0 : i32
    %c0_i32_1 = arith.constant 0 : i32
    %c0_i32_2 = arith.constant 0 : i32
    return %c0_i32, %c0_i32_0, %c0_i32_1 : i32, i32, i32
  }
  func.func @transform_3(%arg0: i32) -> (i32, i32) {
    %c0_i32 = arith.constant 0 : i32
    %c0_i32_0 = arith.constant 0 : i32
    %c0_i32_1 = arith.constant 0 : i32
    return %c0_i32, %c0_i32_0 : i32, i32
  }
  func.func @transform_4(%arg0: i32) -> (i32, i32) {
    %c0_i32 = arith.constant 0 : i32
    %c0_i32_0 = arith.constant 0 : i32
    %c0_i32_1 = arith.constant 0 : i32
    return %c0_i32, %c0_i32_0 : i32, i32
  }
  func.func @transform_5(%arg0: i32) -> (i32, i32) {
    %c0_i32 = arith.constant 0 : i32
    %c0_i32_0 = arith.constant 0 : i32
    return %arg0, %c0_i32 : i32, i32
  }
}

module attributes {stable_mosaic.version = 11 : i64} {
  func.func @conv_stats_kernel(%arg0: i32, %arg1: memref<32x128xbf16, #tpu.memory_space<vmem>>, %arg2: memref<128x128xbf16, #tpu.memory_space<vmem>>, %arg3: memref<32x16xbf16, #tpu.memory_space<vmem>>, %arg4: memref<1x8x128xf32, #tpu.memory_space<vmem>>, %arg5: memref<1x8x128xf32, #tpu.memory_space<vmem>>) attributes {dimension_semantics = [#tpu.dimension_semantics<parallel>], iteration_bounds = array<i64: 1>, scalar_prefetch = 0 : i64, scratch_operands = 0 : i64, tpu.core_type = #tpu.core_type<tc>, window_params = [{transform_indices = @transform_0, window_bounds = array<i64: 32, 128>}, {pipeline_mode = #tpu.pipeline_mode<synchronous>, transform_indices = @transform_1, window_bounds = array<i64: 128, 128>}, {transform_indices = @transform_2, window_bounds = array<i64: 32, 16>}, {transform_indices = @transform_3, window_bounds = array<i64: 1, 8, 128>}, {transform_indices = @transform_4, window_bounds = array<i64: 1, 8, 128>}]} {
    %c0 = arith.constant 0 : index
    %c0_0 = arith.constant 0 : index
    %0 = vector.load %arg1[%c0, %c0_0] : memref<32x128xbf16, #tpu.memory_space<vmem>>, vector<32x128xbf16>
    %c0_1 = arith.constant 0 : index
    %c0_2 = arith.constant 0 : index
    %1 = vector.load %arg2[%c0_1, %c0_2] : memref<128x128xbf16, #tpu.memory_space<vmem>>, vector<128x128xbf16>
    %cst = arith.constant dense<0.000000e+00> : vector<32x128xf32>
    %2 = tpu.matmul %0, %1, %cst {dimension_numbers = #tpu.dot_dimension_numbers<[1], [0], [0], [1], [0, 0, 1, 1], [], []>} : vector<32x128xbf16>, vector<128x128xbf16>, vector<32x128xf32> -> vector<32x128xf32>
    %3 = vector.extract_strided_slice %2 {offsets = [0, 0], sizes = [32, 16], strides = [1, 1]} : vector<32x128xf32> to vector<32x16xf32>
    %4 = arith.truncf %3 : vector<32x16xf32> to vector<32x16xbf16>
    %c0_3 = arith.constant 0 : index
    %c0_4 = arith.constant 0 : index
    %5 = vector.load %arg3[%c0_3, %c0_4] : memref<32x16xbf16, #tpu.memory_space<vmem>>, vector<32x16xbf16>
    tpu.vector_store %arg3[%c0_3, %c0_4], %4 {strides = array<i32>} : memref<32x16xbf16, #tpu.memory_space<vmem>>, vector<32x16xbf16>,
    %cst_5 = arith.constant dense<0.000000e+00> : vector<128xf32>
    %6 = vector.multi_reduction <add>, %2, %cst_5 [0] : vector<32x128xf32> to vector<128xf32>
    %7 = vector.shape_cast %6 : vector<128xf32> to vector<1x128xf32>
    %8 = arith.mulf %2, %2 : vector<32x128xf32>
    %cst_6 = arith.constant dense<0.000000e+00> : vector<128xf32>
    %9 = vector.multi_reduction <add>, %8, %cst_6 [0] : vector<32x128xf32> to vector<128xf32>
    %10 = vector.shape_cast %9 : vector<128xf32> to vector<1x128xf32>
    %11 = vector.shape_cast %7 : vector<1x128xf32> to vector<1x128xf32>
    %12 = vector.broadcast %11 : vector<1x128xf32> to vector<8x128xf32>
    %13 = vector.shape_cast %12 : vector<8x128xf32> to vector<1x8x128xf32>
    %c0_7 = arith.constant 0 : index
    %c0_8 = arith.constant 0 : index
    %c0_9 = arith.constant 0 : index
    %14 = vector.load %arg4[%c0_7, %c0_8, %c0_9] : memref<1x8x128xf32, #tpu.memory_space<vmem>>, vector<1x8x128xf32>
    tpu.vector_store %arg4[%c0_7, %c0_8, %c0_9], %13 {strides = array<i32>} : memref<1x8x128xf32, #tpu.memory_space<vmem>>, vector<1x8x128xf32>,
    %15 = vector.shape_cast %10 : vector<1x128xf32> to vector<1x128xf32>
    %16 = vector.broadcast %15 : vector<1x128xf32> to vector<8x128xf32>
    %17 = vector.shape_cast %16 : vector<8x128xf32> to vector<1x8x128xf32>
    %c0_10 = arith.constant 0 : index
    %c0_11 = arith.constant 0 : index
    %c0_12 = arith.constant 0 : index
    %18 = vector.load %arg5[%c0_10, %c0_11, %c0_12] : memref<1x8x128xf32, #tpu.memory_space<vmem>>, vector<1x8x128xf32>
    tpu.vector_store %arg5[%c0_10, %c0_11, %c0_12], %17 {strides = array<i32>} : memref<1x8x128xf32, #tpu.memory_space<vmem>>, vector<1x8x128xf32>,
    return
  }
  func.func @transform_0(%arg0: i32) -> (i32, i32) {
    %c0_i32 = arith.constant 0 : i32
    %c0_i32_0 = arith.constant 0 : i32
    return %arg0, %c0_i32 : i32, i32
  }
  func.func @transform_1(%arg0: i32) -> (i32, i32) {
    %c0_i32 = arith.constant 0 : i32
    %c0_i32_0 = arith.constant 0 : i32
    %c0_i32_1 = arith.constant 0 : i32
    return %c0_i32, %c0_i32_0 : i32, i32
  }
  func.func @transform_2(%arg0: i32) -> (i32, i32) {
    %c0_i32 = arith.constant 0 : i32
    %c0_i32_0 = arith.constant 0 : i32
    return %arg0, %c0_i32 : i32, i32
  }
  func.func @transform_3(%arg0: i32) -> (i32, i32, i32) {
    %c0_i32 = arith.constant 0 : i32
    %c0_i32_0 = arith.constant 0 : i32
    %c0_i32_1 = arith.constant 0 : i32
    return %arg0, %c0_i32, %c0_i32_0 : i32, i32, i32
  }
  func.func @transform_4(%arg0: i32) -> (i32, i32, i32) {
    %c0_i32 = arith.constant 0 : i32
    %c0_i32_0 = arith.constant 0 : i32
    %c0_i32_1 = arith.constant 0 : i32
    return %arg0, %c0_i32, %c0_i32_0 : i32, i32, i32
  }
}

module attributes {stable_mosaic.version = 11 : i64} {
  func.func @final_sigmoid_kernel(%arg0: i32, %arg1: memref<8x256xbf16, #tpu.memory_space<vmem>>, %arg2: memref<256x128xbf16, #tpu.memory_space<vmem>>, %arg3: memref<8x128xf32, #tpu.memory_space<vmem>>) attributes {dimension_semantics = [#tpu.dimension_semantics<parallel>], iteration_bounds = array<i64: 1>, scalar_prefetch = 0 : i64, scratch_operands = 0 : i64, tpu.core_type = #tpu.core_type<tc>, window_params = [{transform_indices = @transform_0, window_bounds = array<i64: 8, 256>}, {pipeline_mode = #tpu.pipeline_mode<synchronous>, transform_indices = @transform_1, window_bounds = array<i64: 256, 128>}, {transform_indices = @transform_2, window_bounds = array<i64: 8, 128>}]} {
    %c0 = arith.constant 0 : index
    %c0_0 = arith.constant 0 : index
    %0 = vector.load %arg1[%c0, %c0_0] : memref<8x256xbf16, #tpu.memory_space<vmem>>, vector<8x256xbf16>
    %c0_1 = arith.constant 0 : index
    %c0_2 = arith.constant 0 : index
    %1 = vector.load %arg2[%c0_1, %c0_2] : memref<256x128xbf16, #tpu.memory_space<vmem>>, vector<256x128xbf16>
    %cst = arith.constant dense<0.000000e+00> : vector<8x128xf32>
    %2 = tpu.matmul %0, %1, %cst {dimension_numbers = #tpu.dot_dimension_numbers<[1], [0], [0], [1], [0, 0, 1, 1], [], []>} : vector<8x256xbf16>, vector<256x128xbf16>, vector<8x128xf32> -> vector<8x128xf32>
    %cst_3 = arith.constant 0.000000e+00 : f32
    %3 = vector.broadcast %cst_3 : f32 to vector<8x128xf32>
    %4 = arith.subf %3, %2 : vector<8x128xf32>
    %5 = math.exp %4 : vector<8x128xf32>
    %cst_4 = arith.constant 1.000000e+00 : f32
    %6 = vector.broadcast %cst_4 : f32 to vector<8x128xf32>
    %7 = arith.addf %6, %5 : vector<8x128xf32>
    %8 = tpu.reciprocal %7 {approx = true} : vector<8x128xf32> -> vector<8x128xf32>
    %cst_5 = arith.constant 1.000000e+00 : f32
    %9 = vector.broadcast %cst_5 : f32 to vector<8x128xf32>
    %10 = arith.minimumf %8, %9 : vector<8x128xf32>
    %c0_6 = arith.constant 0 : index
    %c0_7 = arith.constant 0 : index
    %11 = vector.load %arg3[%c0_6, %c0_7] : memref<8x128xf32, #tpu.memory_space<vmem>>, vector<8x128xf32>
    tpu.vector_store %arg3[%c0_6, %c0_7], %10 {strides = array<i32>} : memref<8x128xf32, #tpu.memory_space<vmem>>, vector<8x128xf32>,
    return
  }
  func.func @transform_0(%arg0: i32) -> (i32, i32) {
    %c0_i32 = arith.constant 0 : i32
    %c0_i32_0 = arith.constant 0 : i32
    return %arg0, %c0_i32 : i32, i32
  }
  func.func @transform_1(%arg0: i32) -> (i32, i32) {
    %c0_i32 = arith.constant 0 : i32
    %c0_i32_0 = arith.constant 0 : i32
    %c0_i32_1 = arith.constant 0 : i32
    return %c0_i32, %c0_i32_0 : i32, i32
  }
  func.func @transform_2(%arg0: i32) -> (i32, i32) {
    %c0_i32 = arith.constant 0 : i32
    %c0_i32_0 = arith.constant 0 : i32
    return %arg0, %c0_i32 : i32, i32
  }
}

</mosaic_0001>

<bundles_post_ra>
// kernel: discriminator_forward.6
= control target key start
LH: loop header
LB: loop body
LE: loop exit
PB: predicated region body
PF: predicated region fallthrough
CT: control target
= control target key end

     0   :  { %v69_v8 = vlaneseq  ;;  %vm224_vm0 = vcmask 60416   ;;  %s498_s1 = inlined_call_operand.vmem [shape: f32[1,8,128], index: 1, kind: input, shape index: {}]   ;;  %s499_s2 = inlined_call_operand.vmem [shape: f32[1,8,128], index: 2, kind: input, shape index: {}]   ;;  %s500_s0 = inlined_call_operand.vmem [shape: bf16[128,8], index: 0, kind: input, shape index: {}]   ;;  %s501_s3 = inlined_call_operand.vmem [shape: f32[1,128], index: 3, kind: input, shape index: {}]   ;;  %s502_s4 = inlined_call_operand.vmem [shape: f32[1,128], index: 4, kind: input, shape index: {}]   ;;  %s503_s5 = inlined_call_operand.vmem [shape: bf16[128,8], index: 5, kind: output, shape index: {}]  }
   0x1   :  { %v20_v0 = vld [vmem:[%s498_s1] sm:$0xff]  ;;  %v309_v11 = vld [vmem:[%s500_s0 + $0x8] sm:$0xff]   ;;  %v310_v13 = vld [vmem:[%s500_s0 + $0x10] sm:$0xff]  }
   0x2   :  { %v22_v1 = vld [vmem:[%s499_s2] sm:$0xff]  ;;  %v24_v2 = vmul.f32 0.0078125, %v20_v0  ;;  %v70_v9 = vshrl.u32 %v69_v8, 7  ;;  %v311_v15 = vld [vmem:[%s500_s0 + $0x18] sm:$0xff]   ;;  %v283_v20 = vunpack.c.l.bf16 %v309_v11  ;;  %v313_v21 = vld [vmem:[%s500_s0 + $0x28] sm:$0xff]   ;;  %v284_v23 = vunpack.c.h.bf16 %v309_v11 }
   0x3   :  { %v25_v3 = vmul.f32 0.0078125, %v22_v1  ;;  %v278_v10 = vld [vmem:[%s500_s0] sm:$0xff]   ;;  %v287_v24 = vunpack.c.l.bf16 %v310_v13  ;;  %v288_v25 = vunpack.c.h.bf16 %v310_v13  ;;  %v314_v26 = vld [vmem:[%s500_s0 + $0x30] sm:$0xff]   ;;  %v381_v27 = vld [vmem:[%s500_s0 + $0x38] sm:$0xff]   ;;  %v291_v29 = vunpack.c.l.bf16 %v311_v15 }
   0x4   :  { %v26_v4 = vmul.f32 %v24_v2, %v24_v2  ;;  %v29_v12 = vld [vmem:[%s501_s3] sm:$0x1]  ;;  %v71_v14 = vsub.s32 0, %v70_v9  ;;  %v279_v18 = vunpack.c.l.bf16 %v278_v10  ;;  %v280_v19 = vunpack.c.h.bf16 %v278_v10 }
   0x5   :  { %v312_v16 = vld [vmem:[%s500_s0 + $0x20] sm:$0xff]   ;;  %v292_v30 = vunpack.c.h.bf16 %v311_v15  ;;  %v299_v35 = vunpack.c.l.bf16 %v313_v21  ;;  %v300_v36 = vunpack.c.h.bf16 %v313_v21  ;;  %v303_v37 = vunpack.c.l.bf16 %v314_v26 }
   0x6   :  { %v27_v5 = vsub.f32 %v25_v3, %v26_v4  ;;  %v33_v28 = vld [vmem:[%s502_s4] sm:$0x1]  ;;  %v295_v31 = vunpack.c.l.bf16 %v312_v16  ;;  %v296_v32 = vunpack.c.h.bf16 %v312_v16  ;;  %v304_v38 = vunpack.c.h.bf16 %v314_v26 }
   0x7   :  { %v307_v39 = vunpack.c.l.bf16 %v381_v27  ;;  %v308_v40 = vunpack.c.h.bf16 %v381_v27 }
   0x8   :  { %v28_v6 = vmax.f32 %v27_v5, 0.0 }
   0xa   :  { %v30_v7 = vadd.f32 1e-05, %v28_v6 }
   0xc   :  { %316 = vrsqrt.f32 %v30_v7 }
  0x19   :  { %v317_v17 = vpop.eup %316 }
  0x1a   :  { %v32_v22 = vmul.f32 %v317_v17, %v29_v12 }
  0x1c   :  { %v34_v33 = vmul.f32 %v32_v22, %v24_v2  ;;  %v386_v34 = vrot.slane %v32_v22, %v71_v14 }
  0x1e   :  { %v35_v41 = vsub.f32 %v33_v28, %v34_v33  ;;  %v74_v42 = vmul.f32 %v279_v18, %v386_v34  ;;  %v75_v43 = vmul.f32 %v280_v19, %v386_v34  ;;  %v76_v44 = vmul.f32 %v283_v20, %v386_v34 }
  0x1f   :  { %v77_v45 = vmul.f32 %v284_v23, %v386_v34  ;;  %v78_v46 = vmul.f32 %v287_v24, %v386_v34  ;;  %v79_v47 = vmul.f32 %v288_v25, %v386_v34  ;;  %v80_v48 = vmul.f32 %v291_v29, %v386_v34 }
  0x20   :  { %v397_v49 = vrot.slane %v35_v41, %v71_v14  ;;  %v81_v50 = vmul.f32 %v292_v30, %v386_v34  ;;  %v82_v51 = vmul.f32 %v295_v31, %v386_v34  ;;  %v83_v52 = vmul.f32 %v296_v32, %v386_v34 }
  0x21   :  { %v84_v53 = vmul.f32 %v299_v35, %v386_v34  ;;  %v85_v54 = vmul.f32 %v300_v36, %v386_v34  ;;  %v405_v55 = vmul.f32 %v303_v37, %v386_v34  ;;  %v408_v56 = vmul.f32 %v304_v38, %v386_v34 }
  0x22   :  { %v96_v57 = vadd.f32 %v397_v49, %v74_v42  ;;  %v97_v58 = vadd.f32 %v397_v49, %v75_v43  ;;  %v98_v59 = vadd.f32 %v397_v49, %v76_v44  ;;  %v99_v60 = vadd.f32 %v397_v49, %v77_v45 }
  0x23   :  { %v100_v61 = vadd.f32 %v397_v49, %v78_v46  ;;  %v101_v62 = vadd.f32 %v397_v49, %v79_v47  ;;  %v102_v63 = vadd.f32 %v397_v49, %v80_v48  ;;  %v103_v0 = vadd.f32 %v397_v49, %v81_v50 }
  0x24   :  { %vm112_vm1 = vcmp.gt.f32.partialorder %v96_v57, 0.0  ;;  %v128_v1 = vmul.f32 0.2, %v96_v57  ;;  %vm113_vm2 = vcmp.gt.f32.partialorder %v97_v58, 0.0  ;;  %v129_v2 = vmul.f32 0.2, %v97_v58 }
  0x25   :  { %vm114_vm3 = vcmp.gt.f32.partialorder %v98_v59, 0.0  ;;  %v130_v3 = vmul.f32 0.2, %v98_v59  ;;  %vm115_vm4 = vcmp.gt.f32.partialorder %v99_v60, 0.0  ;;  %v131_v4 = vmul.f32 0.2, %v99_v60 }
  0x26   :  { %v144_v5 = vsel %vm112_vm1, %v96_v57, %v128_v1  ;;  %v145_v6 = vsel %vm113_vm2, %v97_v58, %v129_v2  ;;  %vm116_vm5 = vcmp.gt.f32.partialorder %v100_v61, 0.0  ;;  %v132_v7 = vmul.f32 0.2, %v100_v61 }
  0x27   :  { %v261_v8 = vpack.c.bf16 %v144_v5, %v144_v5  ;;  %v262_v9 = vpack.c.bf16 %v145_v6, %v145_v6  ;;  %v146_v10 = vsel %vm114_vm3, %v98_v59, %v130_v3  ;;  %v147_v11 = vsel %vm115_vm4, %v99_v60, %v131_v4 }
  0x28   :  { %v263_v12 = vpack.c.bf16 %v146_v10, %v146_v10  ;;  %v264_v13 = vpack.c.bf16 %v147_v11, %v147_v11  ;;  %v148_v14 = vsel %vm116_vm5, %v100_v61, %v132_v7  ;;  %vm117_vm6 = vcmp.gt.f32.partialorder %v101_v62, 0.0 }
  0x29   :  { %225 = vst.msk [vmem:[%s503_s5] sm:$0xf] %vm224_vm0, %v261_v8  ;;  %226 = vst.msk [vmem:[%s503_s5 + $0x4] sm:$0xf] %vm224_vm0, %v262_v9  ;;  %v265_v15 = vpack.c.bf16 %v148_v14, %v148_v14  ;;  %v133_v16 = vmul.f32 0.2, %v101_v62  ;;  %v104_v19 = vadd.f32 %v397_v49, %v82_v51  ;;  %v105_v20 = vadd.f32 %v397_v49, %v83_v52 }
  0x2a   :  { %vm118_vm7 = vcmp.gt.f32.partialorder %v102_v63, 0.0  ;;  %v134_v17 = vmul.f32 0.2, %v102_v63  ;;  %227 = vst.msk [vmem:[%s503_s5 + $0x8] sm:$0xf] %vm224_vm0, %v263_v12  ;;  %vm119_vm8 = vcmp.gt.f32.partialorder %v103_v0, 0.0  ;;  %v106_v23 = vadd.f32 %v397_v49, %v84_v53 }
  0x2b   :  { %228 = vst.msk [vmem:[%s503_s5 + $0xc] sm:$0xf] %vm224_vm0, %v264_v13  ;;  %v135_v18 = vmul.f32 0.2, %v103_v0  ;;  %229 = vst.msk [vmem:[%s503_s5 + $0x10] sm:$0xf] %vm224_vm0, %v265_v15  ;;  %v149_v21 = vsel %vm117_vm6, %v101_v62, %v133_v16  ;;  %v107_v24 = vadd.f32 %v397_v49, %v85_v54  ;;  %v108_v37 = vadd.f32 %v397_v49, %v405_v55 }
  0x2c   :  { %v150_v22 = vsel %vm118_vm7, %v102_v63, %v134_v17  ;;  %v266_v25 = vpack.c.bf16 %v149_v21, %v149_v21  ;;  %vm120_vm9 = vcmp.gt.f32.partialorder %v104_v19, 0.0  ;;  %v136_v30 = vmul.f32 0.2, %v104_v19 }
  0x2d   :  { %v267_v26 = vpack.c.bf16 %v150_v22, %v150_v22  ;;  %v151_v28 = vsel %vm119_vm8, %v103_v0, %v135_v18  ;;  %vm121_vm10 = vcmp.gt.f32.partialorder %v105_v20, 0.0  ;;  %v137_v31 = vmul.f32 0.2, %v105_v20 }
  0x2e   :  { %v268_v29 = vpack.c.bf16 %v151_v28, %v151_v28  ;;  %230 = vst.msk [vmem:[%s503_s5 + $0x14] sm:$0xf] %vm224_vm0, %v266_v25  ;;  %vm122_vm11 = vcmp.gt.f32.partialorder %v106_v23, 0.0  ;;  %v138_v32 = vmul.f32 0.2, %v106_v23  ;;  %vm123_vm12 = vcmp.gt.f32.partialorder %v107_v24, 0.0 }
  0x2f   :  { %231 = vst.msk [vmem:[%s503_s5 + $0x18] sm:$0xf] %vm224_vm0, %v267_v26  ;;  %v139_v33 = vmul.f32 0.2, %v107_v24  ;;  %v152_v35 = vsel %vm120_vm9, %v104_v19, %v136_v30  ;;  %v153_v36 = vsel %vm121_vm10, %v105_v20, %v137_v31  ;;  %v109_v38 = vadd.f32 %v397_v49, %v408_v56 }
  0x30   :  { %232 = vst.msk [vmem:[%s503_s5 + $0x1c] sm:$0xf] %vm224_vm0, %v268_v29  ;;  %v269_v41 = vpack.c.bf16 %v152_v35, %v152_v35  ;;  %v270_v42 = vpack.c.bf16 %v153_v36, %v153_v36  ;;  %v154_v43 = vsel %vm122_vm11, %v106_v23, %v138_v32  ;;  %vm124_vm13 = vcmp.gt.f32.partialorder %v108_v37, 0.0 }
  0x31   :  { %v155_v44 = vsel %vm123_vm12, %v107_v24, %v139_v33  ;;  %v271_v45 = vpack.c.bf16 %v154_v43, %v154_v43  ;;  %v140_v47 = vmul.f32 0.2, %v108_v37  ;;  %vm125_vm14 = vcmp.gt.f32.partialorder %v109_v38, 0.0 }
  0x32   :  { %v272_v46 = vpack.c.bf16 %v155_v44, %v155_v44  ;;  %233 = vst.msk [vmem:[%s503_s5 + $0x20] sm:$0xf] %vm224_vm0, %v269_v41  ;;  %234 = vst.msk [vmem:[%s503_s5 + $0x24] sm:$0xf] %vm224_vm0, %v270_v42  ;;  %v141_v48 = vmul.f32 0.2, %v109_v38  ;;  %v88_v50 = vmul.f32 %v307_v39, %v386_v34  ;;  %v89_v51 = vmul.f32 %v308_v40, %v386_v34 }
  0x33   :  { %235 = vst.msk [vmem:[%s503_s5 + $0x28] sm:$0xf] %vm224_vm0, %v271_v45  ;;  %v156_v52 = vsel %vm124_vm13, %v108_v37, %v140_v47 }
  0x34   :  { %236 = vst.msk [vmem:[%s503_s5 + $0x2c] sm:$0xf] %vm224_vm0, %v272_v46  ;;  %v273_v53 = vpack.c.bf16 %v156_v52, %v156_v52  ;;  %v157_v54 = vsel %vm125_vm14, %v109_v38, %v141_v48  ;;  %v110_v55 = vadd.f32 %v397_v49, %v88_v50  ;;  %v111_v39 = vadd.f32 %v397_v49, %v89_v51 }
  0x35   :  { %v274_v56 = vpack.c.bf16 %v157_v54, %v157_v54 }
  0x36   :  { %237 = vst.msk [vmem:[%s503_s5 + $0x30] sm:$0xf] %vm224_vm0, %v273_v53  ;;  %vm126_vm15 = vcmp.gt.f32.partialorder %v110_v55, 0.0  ;;  %v142_v27 = vmul.f32 0.2, %v110_v55  ;;  %vm127_vm1 = vcmp.gt.f32.partialorder %v111_v39, 0.0 }
  0x37   :  { %v143_v34 = vmul.f32 0.2, %v111_v39  ;;  %238 = vst.msk [vmem:[%s503_s5 + $0x34] sm:$0xf] %vm224_vm0, %v274_v56 }
  0x38   :  { %v158_v40 = vsel %vm126_vm15, %v110_v55, %v142_v27 }
  0x39   :  { %v159_v57 = vsel %vm127_vm1, %v111_v39, %v143_v34  ;;  %v275_v58 = vpack.c.bf16 %v158_v40, %v158_v40 }
  0x3a   :  { %v276_v59 = vpack.c.bf16 %v159_v57, %v159_v57 }
  0x3b   :  { %239 = vst.msk [vmem:[%s503_s5 + $0x38] sm:$0xf] %vm224_vm0, %v275_v58 }
  0x3c   :  { %240 = vst.msk [vmem:[%s503_s5 + $0x3c] sm:$0xf] %vm224_vm0, %v276_v59 }

// kernel: discriminator_forward.5
= control target key start
LH: loop header
LB: loop body
LE: loop exit
PB: predicated region body
PF: predicated region fallthrough
CT: control target
= control target key end

     0   :  { %vm304_vm0 = vcmask 60416   ;;  %s685_s1 = inlined_call_operand.vmem [shape: bf16[128,128], index: 1, kind: input, shape index: {}]   ;;  %s686_s0 = inlined_call_operand.vmem [shape: bf16[128,128], index: 0, kind: input, shape index: {}]   ;;  %s687_s2 = inlined_call_operand.vmem [shape: bf16[128,8], index: 2, kind: output, shape index: {0}]   ;;  %s688_s3 = inlined_call_operand.vmem [shape: f32[1,8,128], index: 3, kind: output, shape index: {1}]   ;;  %s689_s4 = inlined_call_operand.vmem [shape: f32[1,8,128], index: 4, kind: output, shape index: {2}]  }
   0x1   :  { %v505_v0 = vld [vmem:[%s685_s1 + $0x38] sm:$0xff]   ;;  %v506_v1 = vld [vmem:[%s685_s1 + $0x30] sm:$0xff]   ;;  %v507_v2 = vld [vmem:[%s685_s1 + $0x28] sm:$0xff]  }
   0x2   :  { %457 = vmatprep.subr.bf16.mxu0 %v505_v0  ;;  %489 = vmatprep.subr.bf16.mxu1 %v505_v0  ;;  %v508_v3 = vld [vmem:[%s685_s1 + $0x20] sm:$0xff]   ;;  %v509_v5 = vld [vmem:[%s685_s1 + $0x18] sm:$0xff]   ;;  %v510_v7 = vld [vmem:[%s685_s1 + $0x10] sm:$0xff]  }
   0x3   :  { %458 = vmatpush3.bf16.msra.mxu0 %v505_v0  ;;  %497 = vmatpush3.bf16.msra.mxu1 %v505_v0  ;;  %v513_v4 = vld [vmem:[%s686_s0] sm:$0xff]   ;;  %v511_v8 = vld [vmem:[%s685_s1 + $0x8] sm:$0xff]   ;;  %v515_v12 = vld [vmem:[%s686_s0 + $0x10] sm:$0xff]  }
   0x4   :  { %459 = vmatprep.subr.bf16.mxu0 %v506_v1  ;;  %490 = vmatprep.subr.bf16.mxu1 %v506_v1  ;;  %v517_v6 = vld [vmem:[%s686_s0 + $0x20] sm:$0xff]   ;;  %v514_v10 = vld [vmem:[%s686_s0 + $0x8] sm:$0xff]   ;;  %v519_v13 = vld [vmem:[%s686_s0 + $0x30] sm:$0xff]  }
   0x5   :  { %473 = vmatprep.mubr.bf16.mxu0 %v513_v4  ;;  %481 = vmatprep.mubr.bf16.mxu1 %v517_v6  ;;  %v512_v9 = vld [vmem:[%s685_s1] sm:$0xff]   ;;  %v518_v11 = vld [vmem:[%s686_s0 + $0x28] sm:$0xff]   ;;  %v516_v14 = vld [vmem:[%s686_s0 + $0x18] sm:$0xff]  }
   0x6   :  { %v520_v15 = vld [vmem:[%s686_s0 + $0x38] sm:$0xff]  }
   0x7   :  { %460 = vmatpush3.bf16.msra.mxu0 %v506_v1  ;;  %498 = vmatpush3.bf16.msra.mxu1 %v506_v1 }
   0x8   :  { %461 = vmatprep.subr.bf16.mxu0 %v507_v2  ;;  %491 = vmatprep.subr.bf16.mxu1 %v507_v2 }
   0xb   :  { %462 = vmatpush3.bf16.msra.mxu0 %v507_v2  ;;  %499 = vmatpush3.bf16.msra.mxu1 %v507_v2 }
   0xc   :  { %463 = vmatprep.subr.bf16.mxu0 %v508_v3  ;;  %492 = vmatprep.subr.bf16.mxu1 %v508_v3 }
   0xf   :  { %464 = vmatpush3.bf16.msra.mxu0 %v508_v3  ;;  %500 = vmatpush3.bf16.msra.mxu1 %v508_v3 }
  0x10   :  { %465 = vmatprep.subr.bf16.mxu0 %v509_v5  ;;  %493 = vmatprep.subr.bf16.mxu1 %v509_v5 }
  0x13   :  { %466 = vmatpush3.bf16.msra.mxu0 %v509_v5  ;;  %501 = vmatpush3.bf16.msra.mxu1 %v509_v5 }
  0x14   :  { %467 = vmatprep.subr.bf16.mxu0 %v510_v7  ;;  %494 = vmatprep.subr.bf16.mxu1 %v510_v7 }
  0x17   :  { %468 = vmatpush3.bf16.msra.mxu0 %v510_v7  ;;  %502 = vmatpush3.bf16.msra.mxu1 %v510_v7 }
  0x18   :  { %469 = vmatprep.subr.bf16.mxu0 %v511_v8  ;;  %495 = vmatprep.subr.bf16.mxu1 %v511_v8 }
  0x1b   :  { %470 = vmatpush3.bf16.msra.mxu0 %v511_v8  ;;  %503 = vmatpush3.bf16.msra.mxu1 %v511_v8 }
  0x1c   :  { %471 = vmatprep.subr.bf16.mxu0 %v512_v9  ;;  %496 = vmatprep.subr.bf16.mxu1 %v512_v9 }
  0x1f   :  { %472 = vmatpush3.bf16.msra.mxu0 %v512_v9  ;;  %504 = vmatpush3.bf16.msra.mxu1 %v512_v9 }
  0x22   :  { %474 = vmatmul.mubr.bf16.vlgmr.msra.gmra.mxu0 %v514_v10  ;;  %482 = vmatmul.mubr.bf16.vlgmr.msra.gmra.mxu1 %v518_v11 }
  0x23   :  { %477 = vmatprep.mubr.bf16.mxu0 %v515_v12  ;;  %485 = vmatprep.mubr.bf16.mxu1 %v519_v13 }
  0x2a   :  { %478 = vmatmul.mubr.bf16.gmra.mxu0 %v516_v14  ;;  %486 = vmatmul.mubr.bf16.gmra.mxu1 %v520_v15 }
  0xe2   :  { %v475_v16 = vpop.f32.mrf.mxu0  ;;  %v594_v17 = vpop.f32.mrf.mxu1 }
  0xe3   :  { %v427_v18 = vpack.c.bf16 %v475_v16, %v475_v16  ;;  %v435_v19 = vpack.c.bf16 %v594_v17, %v594_v17  ;;  %v344_v37 = vmul.f32 %v475_v16, %v475_v16  ;;  %v352_v11 = vmul.f32 %v594_v17, %v594_v17 }
  0xe4   :  { %v177_v20 = vpop.f32.mrf.mxu0  ;;  %v598_v21 = vpop.f32.mrf.mxu1 }
  0xe5   :  { %307 = vst.msk [vmem:[%s687_s2 + $0x8] sm:$0xf] %vm304_vm0, %v427_v18  ;;  %v425_v22 = vpack.c.bf16 %v177_v20, %v177_v20  ;;  %315 = vst.msk [vmem:[%s687_s2 + $0x28] sm:$0xf] %vm304_vm0, %v435_v19  ;;  %v433_v23 = vpack.c.bf16 %v598_v21, %v598_v21  ;;  %v342_v28 = vmul.f32 %v177_v20, %v177_v20 }
  0xe6   :  { %v476_v24 = vpop.f32.mrf.mxu0  ;;  %v610_v25 = vpop.f32.mrf.mxu1  ;;  %v350_v5 = vmul.f32 %v598_v21, %v598_v21 }
  0xe7   :  { %305 = vst.msk [vmem:[%s687_s2] sm:$0xf] %vm304_vm0, %v425_v22  ;;  %v428_v26 = vpack.c.bf16 %v476_v24, %v476_v24  ;;  %313 = vst.msk [vmem:[%s687_s2 + $0x20] sm:$0xf] %vm304_vm0, %v433_v23  ;;  %v436_v27 = vpack.c.bf16 %v610_v25, %v610_v25  ;;  %v345_v44 = vmul.f32 %v476_v24, %v476_v24 }
  0xe8   :  { %v180_v29 = vpop.f32.mrf.mxu0  ;;  %v212_v30 = vpop.f32.mrf.mxu1  ;;  %v353_v14 = vmul.f32 %v610_v25, %v610_v25 }
  0xe9   :  { %308 = vst.msk [vmem:[%s687_s2 + $0xc] sm:$0xf] %vm304_vm0, %v428_v26  ;;  %v426_v31 = vpack.c.bf16 %v180_v29, %v180_v29  ;;  %v321_v32 = vadd.f32 %v180_v29, %v177_v20  ;;  %v343_v33 = vmul.f32 %v180_v29, %v180_v29  ;;  %316 = vst.msk [vmem:[%s687_s2 + $0x2c] sm:$0xf] %vm304_vm0, %v436_v27 }
  0xea   :  { %v434_v34 = vpack.c.bf16 %v212_v30, %v212_v30  ;;  %v479_v35 = vpop.f32.mrf.mxu0  ;;  %v487_v36 = vpop.f32.mrf.mxu1  ;;  %v351_v9 = vmul.f32 %v212_v30, %v212_v30 }
  0xeb   :  { %306 = vst.msk [vmem:[%s687_s2 + $0x4] sm:$0xf] %vm304_vm0, %v426_v31  ;;  %v322_v38 = vadd.f32 %v475_v16, %v321_v32  ;;  %v358_v39 = vadd.f32 %v343_v33, %v342_v28  ;;  %v431_v40 = vpack.c.bf16 %v479_v35, %v479_v35  ;;  %v439_v42 = vpack.c.bf16 %v487_v36, %v487_v36 }
  0xec   :  { %314 = vst.msk [vmem:[%s687_s2 + $0x24] sm:$0xf] %vm304_vm0, %v434_v34  ;;  %v193_v41 = vpop.f32.mrf.mxu0  ;;  %v225_v43 = vpop.f32.mrf.mxu1  ;;  %v348_v63 = vmul.f32 %v479_v35, %v479_v35 }
  0xed   :  { %v359_v45 = vadd.f32 %v358_v39, %v344_v37  ;;  %311 = vst.msk [vmem:[%s687_s2 + $0x18] sm:$0xf] %vm304_vm0, %v431_v40  ;;  %v429_v46 = vpack.c.bf16 %v193_v41, %v193_v41  ;;  %v323_v47 = vadd.f32 %v476_v24, %v322_v38  ;;  %319 = vst.msk [vmem:[%s687_s2 + $0x38] sm:$0xf] %vm304_vm0, %v439_v42 }
  0xee   :  { %v480_v48 = vpop.f32.mrf.mxu0  ;;  %v437_v49 = vpack.c.bf16 %v225_v43, %v225_v43  ;;  %v488_v50 = vpop.f32.mrf.mxu1  ;;  %v346_v52 = vmul.f32 %v193_v41, %v193_v41  ;;  %v354_v19 = vmul.f32 %v225_v43, %v225_v43  ;;  %v356_v24 = vmul.f32 %v487_v36, %v487_v36 }
  0xef   :  { %309 = vst.msk [vmem:[%s687_s2 + $0x10] sm:$0xf] %vm304_vm0, %v429_v46  ;;  %v324_v51 = vadd.f32 %v323_v47, %v193_v41  ;;  %v360_v53 = vadd.f32 %v359_v45, %v345_v44  ;;  %v432_v54 = vpack.c.bf16 %v480_v48, %v480_v48  ;;  %v440_v56 = vpack.c.bf16 %v488_v50, %v488_v50 }
  0xf0   :  { %v196_v55 = vpop.f32.mrf.mxu0  ;;  %317 = vst.msk [vmem:[%s687_s2 + $0x30] sm:$0xf] %vm304_vm0, %v437_v49  ;;  %v228_v57 = vpop.f32.mrf.mxu1  ;;  %v349_v2 = vmul.f32 %v480_v48, %v480_v48  ;;  %v357_v28 = vmul.f32 %v488_v50, %v488_v50 }
  0xf1   :  { %v361_v58 = vadd.f32 %v360_v53, %v346_v52  ;;  %312 = vst.msk [vmem:[%s687_s2 + $0x1c] sm:$0xf] %vm304_vm0, %v432_v54  ;;  %v430_v59 = vpack.c.bf16 %v196_v55, %v196_v55  ;;  %v325_v60 = vadd.f32 %v324_v51, %v196_v55  ;;  %v347_v61 = vmul.f32 %v196_v55, %v196_v55 }
  0xf2   :  { %320 = vst.msk [vmem:[%s687_s2 + $0x3c] sm:$0xf] %vm304_vm0, %v440_v56  ;;  %v438_v62 = vpack.c.bf16 %v228_v57, %v228_v57  ;;  %v355_v23 = vmul.f32 %v228_v57, %v228_v57 }
  0xf3   :  { %310 = vst.msk [vmem:[%s687_s2 + $0x14] sm:$0xf] %vm304_vm0, %v430_v59  ;;  %v326_v0 = vadd.f32 %v479_v35, %v325_v60  ;;  %v362_v1 = vadd.f32 %v361_v58, %v347_v61 }
  0xf4   :  { %318 = vst.msk [vmem:[%s687_s2 + $0x34] sm:$0xf] %vm304_vm0, %v438_v62 }
  0xf5   :  { %v327_v3 = vadd.f32 %v480_v48, %v326_v0  ;;  %v363_v4 = vadd.f32 %v362_v1, %v348_v63 }
  0xf7   :  { %v364_v6 = vadd.f32 %v363_v4, %v349_v2  ;;  %v328_v7 = vadd.f32 %v327_v3, %v598_v21 }
  0xf9   :  { %v329_v8 = vadd.f32 %v328_v7, %v212_v30  ;;  %v365_v10 = vadd.f32 %v364_v6, %v350_v5 }
  0xfb   :  { %v330_v12 = vadd.f32 %v594_v17, %v329_v8  ;;  %v366_v13 = vadd.f32 %v365_v10, %v351_v9 }
  0xfd   :  { %v367_v15 = vadd.f32 %v366_v13, %v352_v11  ;;  %v331_v16 = vadd.f32 %v610_v25, %v330_v12 }
  0xff   :  { %v332_v18 = vadd.f32 %v331_v16, %v225_v43  ;;  %v368_v20 = vadd.f32 %v367_v15, %v353_v14 }
 0x101   :  { %v369_v22 = vadd.f32 %v368_v20, %v354_v19  ;;  %v333_v21 = vadd.f32 %v332_v18, %v228_v57 }
 0x103   :  { %v334_v26 = vadd.f32 %v487_v36, %v333_v21  ;;  %v370_v27 = vadd.f32 %v369_v22, %v355_v23 }
 0x105   :  { %v335_v29 = vadd.f32 %v488_v50, %v334_v26  ;;  %v371_v30 = vadd.f32 %v370_v27, %v356_v24 }
 0x107   :  { %v336_v17 = vrot.slane %v335_v29, 4  ;;  %v372_v31 = vadd.f32 %v371_v30, %v357_v28 }
 0x109   :  { %v337_v32 = vadd.f32 %v336_v17, %v335_v29  ;;  %v373_v33 = vrot.slane %v372_v31, 4 }
 0x10b   :  { %v338_v34 = vrot.slane %v337_v32, 2  ;;  %v374_v35 = vadd.f32 %v373_v33, %v372_v31 }
 0x10d   :  { %v339_v37 = vadd.f32 %v338_v34, %v337_v32  ;;  %v375_v25 = vrot.slane %v374_v35, 2 }
 0x10f   :  { %v340_v38 = vrot.slane %v339_v37, 1  ;;  %v376_v39 = vadd.f32 %v375_v25, %v374_v35 }
 0x111   :  { %v341_v40 = vadd.f32 %v340_v38, %v339_v37  ;;  %v377_v41 = vrot.slane %v376_v39, 1 }
 0x113   :  { %v378_v42 = vadd.f32 %v377_v41, %v376_v39  ;;  %379 = vst [vmem:[%s688_s3] sm:$0xff] %v341_v40 }
 0x115   :  { %380 = vst [vmem:[%s689_s4] sm:$0xff] %v378_v42 }

// kernel: discriminator_forward.8
= control target key start
LH: loop header
LB: loop body
LE: loop exit
PB: predicated region body
PF: predicated region fallthrough
CT: control target
= control target key end

     0   :  { %v45_v8 = vlaneseq  ;;  %vm92_vm4 = vcmask 125952   ;;  %s180_s1 = inlined_call_operand.vmem [shape: f32[1,8,128], index: 1, kind: input, shape index: {}]   ;;  %s181_s2 = inlined_call_operand.vmem [shape: f32[1,8,128], index: 2, kind: input, shape index: {}]   ;;  %s182_s0 = inlined_call_operand.vmem [shape: bf16[32,16], index: 0, kind: input, shape index: {}]   ;;  %s183_s3 = inlined_call_operand.vmem [shape: f32[1,128], index: 3, kind: input, shape index: {}]   ;;  %s184_s4 = inlined_call_operand.vmem [shape: f32[1,128], index: 4, kind: input, shape index: {}]   ;;  %s185_s5 = inlined_call_operand.vmem [shape: bf16[32,16], index: 5, kind: output, shape index: {}]  }
   0x1   :  { %v20_v0 = vld [vmem:[%s180_s1] sm:$0xff]  ;;  %v117_v12 = vld [vmem:[%s182_s0 + $0x8] sm:$0xff]  }
   0x2   :  { %v22_v1 = vld [vmem:[%s181_s2] sm:$0xff]  ;;  %v24_v2 = vmul.f32 0.03125, %v20_v0  ;;  %v46_v9 = vshrl.u32 %v45_v8, 7  ;;  %v115_v18 = vunpack.c.l.bf16 %v117_v12  ;;  %v116_v20 = vunpack.c.h.bf16 %v117_v12 }
   0x3   :  { %v25_v3 = vmul.f32 0.03125, %v22_v1  ;;  %v29_v10 = vld [vmem:[%s183_s3] sm:$0x1] }
   0x4   :  { %v26_v4 = vmul.f32 %v24_v2, %v24_v2  ;;  %v110_v11 = vld [vmem:[%s182_s0] sm:$0xff]   ;;  %v47_v13 = vsub.s32 0, %v46_v9 }
   0x5   :  { %v111_v16 = vunpack.c.l.bf16 %v110_v11  ;;  %v112_v17 = vunpack.c.h.bf16 %v110_v11  ;;  %v33_v19 = vld [vmem:[%s184_s4] sm:$0x1] }
   0x6   :  { %v27_v5 = vsub.f32 %v25_v3, %v26_v4 }
   0x8   :  { %v28_v6 = vmax.f32 %v27_v5, 0.0 }
   0xa   :  { %v30_v7 = vadd.f32 1e-05, %v28_v6 }
   0xc   :  { %118 = vrsqrt.f32 %v30_v7 }
  0x19   :  { %v119_v14 = vpop.eup %118 }
  0x1a   :  { %v32_v15 = vmul.f32 %v119_v14, %v29_v10 }
  0x1c   :  { %v34_v21 = vmul.f32 %v32_v15, %v24_v2  ;;  %v48_v22 = vrot.slane %v32_v15, %v47_v13 }
  0x1e   :  { %v35_v23 = vsub.f32 %v33_v19, %v34_v21  ;;  %v50_v24 = vmul.f32 %v111_v16, %v48_v22  ;;  %v51_v25 = vmul.f32 %v112_v17, %v48_v22  ;;  %v52_v26 = vmul.f32 %v115_v18, %v48_v22 }
  0x1f   :  { %v53_v27 = vmul.f32 %v116_v20, %v48_v22 }
  0x20   :  { %v58_v28 = vrot.slane %v35_v23, %v47_v13 }
  0x22   :  { %v60_v29 = vadd.f32 %v58_v28, %v50_v24  ;;  %v61_v30 = vadd.f32 %v58_v28, %v51_v25  ;;  %v62_v31 = vadd.f32 %v58_v28, %v52_v26  ;;  %v63_v32 = vadd.f32 %v58_v28, %v53_v27 }
  0x24   :  { %vm64_vm0 = vcmp.gt.f32.partialorder %v60_v29, 0.0  ;;  %v68_v33 = vmul.f32 0.2, %v60_v29  ;;  %vm65_vm1 = vcmp.gt.f32.partialorder %v61_v30, 0.0  ;;  %v69_v34 = vmul.f32 0.2, %v61_v30 }
  0x25   :  { %vm66_vm2 = vcmp.gt.f32.partialorder %v62_v31, 0.0  ;;  %v70_v35 = vmul.f32 0.2, %v62_v31  ;;  %vm67_vm3 = vcmp.gt.f32.partialorder %v63_v32, 0.0  ;;  %v71_v36 = vmul.f32 0.2, %v63_v32 }
  0x26   :  { %v72_v37 = vsel %vm64_vm0, %v60_v29, %v68_v33  ;;  %v73_v38 = vsel %vm65_vm1, %v61_v30, %v69_v34 }
  0x27   :  { %v105_v39 = vpack.c.bf16 %v72_v37, %v72_v37  ;;  %v106_v40 = vpack.c.bf16 %v73_v38, %v73_v38  ;;  %v74_v41 = vsel %vm66_vm2, %v62_v31, %v70_v35  ;;  %v75_v42 = vsel %vm67_vm3, %v63_v32, %v71_v36 }
  0x28   :  { %v107_v43 = vpack.c.bf16 %v74_v41, %v74_v41  ;;  %v108_v44 = vpack.c.bf16 %v75_v42, %v75_v42 }
  0x29   :  { %93 = vst.msk [vmem:[%s185_s5] sm:$0xf] %vm92_vm4, %v105_v39  ;;  %94 = vst.msk [vmem:[%s185_s5 + $0x4] sm:$0xf] %vm92_vm4, %v106_v40 }
  0x2a   :  { %95 = vst.msk [vmem:[%s185_s5 + $0x8] sm:$0xf] %vm92_vm4, %v107_v43  ;;  %96 = vst.msk [vmem:[%s185_s5 + $0xc] sm:$0xf] %vm92_vm4, %v108_v44 }

// kernel: discriminator_forward.7
= control target key start
LH: loop header
LB: loop body
LE: loop exit
PB: predicated region body
PF: predicated region fallthrough
CT: control target
= control target key end

     0   :  { %vm160_vm0 = vcmask 125952   ;;  %s332_s1 = inlined_call_operand.vmem [shape: bf16[128,128], index: 1, kind: input, shape index: {}]   ;;  %s333_s0 = inlined_call_operand.vmem [shape: bf16[32,128], index: 0, kind: input, shape index: {}]   ;;  %s334_s2 = inlined_call_operand.vmem [shape: bf16[32,16], index: 2, kind: output, shape index: {0}]   ;;  %s335_s3 = inlined_call_operand.vmem [shape: f32[1,8,128], index: 3, kind: output, shape index: {1}]   ;;  %s336_s4 = inlined_call_operand.vmem [shape: f32[1,8,128], index: 4, kind: output, shape index: {2}]  }
   0x1   :  { %v249_v0 = vld [vmem:[%s332_s1 + $0x38] sm:$0xff]   ;;  %v250_v1 = vld [vmem:[%s332_s1 + $0x30] sm:$0xff]   ;;  %v251_v2 = vld [vmem:[%s332_s1 + $0x28] sm:$0xff]  }
   0x2   :  { %229 = vmatprep.subr.bf16.mxu0 %v249_v0  ;;  %v252_v3 = vld [vmem:[%s332_s1 + $0x20] sm:$0xff]   ;;  %v253_v5 = vld [vmem:[%s332_s1 + $0x18] sm:$0xff]   ;;  %v254_v6 = vld [vmem:[%s332_s1 + $0x10] sm:$0xff]  }
   0x3   :  { %230 = vmatpush3.bf16.msra.mxu0 %v249_v0  ;;  %v257_v4 = vld [vmem:[%s333_s0] sm:$0xff]   ;;  %v255_v7 = vld [vmem:[%s332_s1 + $0x8] sm:$0xff]  }
   0x4   :  { %231 = vmatprep.subr.bf16.mxu0 %v250_v1  ;;  %245 = vmatprep.mubr.bf16.mxu0 %v257_v4  ;;  %v256_v8 = vld [vmem:[%s332_s1] sm:$0xff]   ;;  %v258_v9 = vld [vmem:[%s333_s0 + $0x8] sm:$0xff]  }
   0x7   :  { %232 = vmatpush3.bf16.msra.mxu0 %v250_v1 }
   0x8   :  { %233 = vmatprep.subr.bf16.mxu0 %v251_v2 }
   0xb   :  { %234 = vmatpush3.bf16.msra.mxu0 %v251_v2 }
   0xc   :  { %235 = vmatprep.subr.bf16.mxu0 %v252_v3 }
   0xf   :  { %236 = vmatpush3.bf16.msra.mxu0 %v252_v3 }
  0x10   :  { %237 = vmatprep.subr.bf16.mxu0 %v253_v5 }
  0x13   :  { %238 = vmatpush3.bf16.msra.mxu0 %v253_v5 }
  0x14   :  { %239 = vmatprep.subr.bf16.mxu0 %v254_v6 }
  0x17   :  { %240 = vmatpush3.bf16.msra.mxu0 %v254_v6 }
  0x18   :  { %241 = vmatprep.subr.bf16.mxu0 %v255_v7 }
  0x1b   :  { %242 = vmatpush3.bf16.msra.mxu0 %v255_v7 }
  0x1c   :  { %243 = vmatprep.subr.bf16.mxu0 %v256_v8 }
  0x1f   :  { %244 = vmatpush3.bf16.msra.mxu0 %v256_v8 }
  0x22   :  { %246 = vmatmul.mubr.bf16.vlgmr.msra.gmra.mxu0 %v258_v9 }
  0xe2   :  { %v247_v10 = vpop.f32.mrf.mxu0 }
  0xe3   :  { %v217_v11 = vpack.c.bf16 %v247_v10, %v247_v10  ;;  %v176_v21 = vmul.f32 %v247_v10, %v247_v10 }
  0xe4   :  { %v129_v12 = vpop.f32.mrf.mxu0 }
  0xe5   :  { %163 = vst.msk [vmem:[%s334_s2 + $0x8] sm:$0xf] %vm160_vm0, %v217_v11  ;;  %v215_v13 = vpack.c.bf16 %v129_v12, %v129_v12  ;;  %v174_v17 = vmul.f32 %v129_v12, %v129_v12 }
  0xe6   :  { %v248_v14 = vpop.f32.mrf.mxu0 }
  0xe7   :  { %161 = vst.msk [vmem:[%s334_s2] sm:$0xf] %vm160_vm0, %v215_v13  ;;  %v218_v15 = vpack.c.bf16 %v248_v14, %v248_v14  ;;  %v177_v24 = vmul.f32 %v248_v14, %v248_v14 }
  0xe8   :  { %v132_v16 = vpop.f32.mrf.mxu0 }
  0xe9   :  { %164 = vst.msk [vmem:[%s334_s2 + $0xc] sm:$0xf] %vm160_vm0, %v218_v15  ;;  %v216_v18 = vpack.c.bf16 %v132_v16, %v132_v16  ;;  %v165_v19 = vadd.f32 %v132_v16, %v129_v12  ;;  %v175_v20 = vmul.f32 %v132_v16, %v132_v16 }
  0xeb   :  { %162 = vst.msk [vmem:[%s334_s2 + $0x4] sm:$0xf] %vm160_vm0, %v216_v18  ;;  %v166_v22 = vadd.f32 %v247_v10, %v165_v19  ;;  %v178_v23 = vadd.f32 %v175_v20, %v174_v17 }
  0xed   :  { %v167_v25 = vadd.f32 %v248_v14, %v166_v22  ;;  %v179_v26 = vadd.f32 %v178_v23, %v176_v21 }
  0xef   :  { %v168_v27 = vrot.slane %v167_v25, 4  ;;  %v180_v28 = vadd.f32 %v179_v26, %v177_v24 }
  0xf1   :  { %v169_v29 = vadd.f32 %v168_v27, %v167_v25  ;;  %v181_v30 = vrot.slane %v180_v28, 4 }
  0xf3   :  { %v170_v31 = vrot.slane %v169_v29, 2  ;;  %v182_v32 = vadd.f32 %v181_v30, %v180_v28 }
  0xf5   :  { %v171_v33 = vadd.f32 %v170_v31, %v169_v29  ;;  %v183_v34 = vrot.slane %v182_v32, 2 }
  0xf7   :  { %v172_v35 = vrot.slane %v171_v33, 1  ;;  %v184_v36 = vadd.f32 %v183_v34, %v182_v32 }
  0xf9   :  { %v173_v37 = vadd.f32 %v172_v35, %v171_v33  ;;  %v185_v38 = vrot.slane %v184_v36, 1 }
  0xfb   :  { %v186_v39 = vadd.f32 %v185_v38, %v184_v36  ;;  %187 = vst [vmem:[%s335_s3] sm:$0xff] %v173_v37 }
  0xfd   :  { %188 = vst [vmem:[%s336_s4] sm:$0xff] %v186_v39 }

// kernel: discriminator_forward.9
= control target key start
LH: loop header
LB: loop body
LE: loop exit
PB: predicated region body
PF: predicated region fallthrough
CT: control target
= control target key end

     0   :  { %s330_s1 = inlined_call_operand.vmem [shape: bf16[256,128], index: 1, kind: input, shape index: {}]   ;;  %s331_s0 = inlined_call_operand.vmem [shape: bf16[8,256], index: 0, kind: input, shape index: {}]   ;;  %s332_s2 = inlined_call_operand.vmem [shape: f32[8,128], index: 2, kind: output, shape index: {}]  }
   0x1   :  { %v239_v0 = vld [vmem:[%s330_s1 + $0x78] sm:$0xff]   ;;  %v241_v2 = vld [vmem:[%s330_s1 + $0x70] sm:$0xff]   ;;  %v243_v4 = vld [vmem:[%s330_s1 + $0x68] sm:$0xff]  }
   0x2   :  { %v240_v1 = vld [vmem:[%s330_s1 + $0x38] sm:$0xff]   ;;  %217 = vmatprep.subr.bf16.mxu0 %v239_v0  ;;  %v242_v3 = vld [vmem:[%s330_s1 + $0x30] sm:$0xff]   ;;  %v244_v5 = vld [vmem:[%s330_s1 + $0x28] sm:$0xff]  }
   0x3   :  { %218 = vmatpush3.bf16.msra.mxu0 %v240_v1  ;;  %v245_v6 = vld [vmem:[%s330_s1 + $0x60] sm:$0xff]   ;;  %v247_v8 = vld [vmem:[%s330_s1 + $0x58] sm:$0xff]   ;;  %v249_v10 = vld [vmem:[%s330_s1 + $0x50] sm:$0xff]  }
   0x4   :  { %219 = vmatprep.subr.bf16.mxu0 %v241_v2  ;;  %v246_v7 = vld [vmem:[%s330_s1 + $0x20] sm:$0xff]   ;;  %v248_v9 = vld [vmem:[%s330_s1 + $0x18] sm:$0xff]   ;;  %v250_v13 = vld [vmem:[%s330_s1 + $0x10] sm:$0xff]  }
   0x5   :  { %v12_v11 = vld [vmem:[%s331_s0] sm:$0xff]  ;;  %v251_v14 = vld [vmem:[%s330_s1 + $0x48] sm:$0xff]  }
   0x6   :  { %v200_v12 = vcombine.high %v12_v11, %v12_v11  ;;  %v252_v15 = vld [vmem:[%s330_s1 + $0x8] sm:$0xff]   ;;  %v253_v16 = vld [vmem:[%s330_s1 + $0x40] sm:$0xff]   ;;  %v199_v18 = vcombine.low %v12_v11, %v12_v11 }
   0x7   :  { %220 = vmatpush3.bf16.msra.mxu0 %v242_v3  ;;  %v254_v17 = vld [vmem:[%s330_s1] sm:$0xff]  }
   0x8   :  { %221 = vmatprep.subr.bf16.mxu0 %v243_v4  ;;  %180 = vmatprep.mubr.bf16.mxu0 %v200_v12 }
   0xb   :  { %222 = vmatpush3.bf16.msra.mxu0 %v244_v5 }
   0xc   :  { %223 = vmatprep.subr.bf16.mxu0 %v245_v6 }
   0xf   :  { %224 = vmatpush3.bf16.msra.mxu0 %v246_v7 }
  0x10   :  { %225 = vmatprep.subr.bf16.mxu0 %v247_v8 }
  0x13   :  { %226 = vmatpush3.bf16.msra.mxu0 %v248_v9 }
  0x14   :  { %227 = vmatprep.subr.bf16.mxu0 %v249_v10 }
  0x17   :  { %228 = vmatpush3.bf16.msra.mxu0 %v250_v13 }
  0x18   :  { %229 = vmatprep.subr.bf16.mxu0 %v251_v14 }
  0x1b   :  { %230 = vmatpush3.bf16.msra.mxu0 %v252_v15 }
  0x1c   :  { %231 = vmatprep.subr.bf16.mxu0 %v253_v16 }
  0x1f   :  { %232 = vmatpush3.bf16.msra.mxu0 %v254_v17 }
  0x22   :  { %181 = vmatmul.mubr.bf16.vlgmr.msra.gmra.mxu0 %v199_v18 }
  0xe2   :  { %v233_v19 = vpop.f32.mrf.mxu0 }
  0xe4   :  { %v234_v20 = vpop.f32.mrf.mxu0 }
  0xe5   :  { %v235_v21 = vadd.f32 %v234_v20, %v233_v19 }
  0xe6   :  { %v236_v22 = vpop.f32.mrf.mxu0 }
  0xe7   :  { %v188_v23 = vsub.f32 0.0, %v235_v21 }
  0xe8   :  { %v237_v24 = vpop.f32.mrf.mxu0 }
  0xe9   :  { %v189_v25 = vmul.f32 1.442695, %v188_v23 }
  0xeb   :  { %257 = vpow2.f32 %v189_v25 }
  0xf8   :  { %v258_v26 = vpop.eup %257 }
  0xf9   :  { %v191_v27 = vadd.f32 1.0, %v258_v26 }
  0xfb   :  { %259 = vrcp.f32 %v191_v27 }
 0x108   :  { %v260_v28 = vpop.eup %259 }
 0x109   :  { %v193_v29 = vmin.f32 %v260_v28, 1.0 }
 0x10b   :  { %194 = vst [vmem:[%s332_s2] sm:$0xff] %v193_v29 }

</bundles_post_ra>
